<compile_context>
chip_gen: v7x
topology: tpu7x:2x2x1
jax: 0.10.0
libtpu: 0.0.40
codegen_flags: <defaults>
</compile_context>

<pallas_src>
import functools

import jax
import jax.numpy as jnp
from jax import lax
from jax.experimental import pallas as pl
from jax.experimental.pallas import tpu as pltpu


def _round_up(x, m):
    return ((x + m - 1) // m) * m


def _pick_group(n, t):
    """Rows packed per super-row: largest power-of-two G <= 128//T dividing N."""
    if t >= 128 or (t & (t - 1)) != 0:
        return 1
    g = 128 // t
    while g > 1 and (n % g != 0 or n // g < 8):
        g //= 2
    return g


def _pick_tile_rows(n_super, row_lanes, side_cols, itemsize):
    """Super-rows per grid step, budgeted against the *padded* VMEM footprint:
    double-buffered phi + side-band blocks (both lane-pad to 128) plus ~8 live
    f32 temporaries of the tile, kept under ~20 MiB (vmem_limit is 32 MiB)."""
    lanes_phi = _round_up(row_lanes, 128)
    lanes_side = _round_up(side_cols, 128)
    per_row = 2 * (lanes_phi * itemsize + lanes_side * 4) + 8 * lanes_phi * 4
    budget = 20 * 1024 * 1024
    sub = 16 if itemsize < 4 else 8            # bf16 packs [16,128]: avoid relayouts
    tile = max(sub, min(budget // per_row, 8192))
    tile = min(tile, _round_up(n_super, sub))
    return max(sub, (tile // sub) * sub)


def _loss_log_haz_kernel(phi_ref, side_ref, out_ref, *, t_steps, g_per_row):
    r, gt = phi_ref.shape
    phi = phi_ref[...].astype(jnp.float32)     # native-dtype ingest, in-kernel upcast

    if g_per_row > 1:
        # Lane-expand idx/events across each super-row's G*T lanes with two tiny MXU
        # matmuls (the MXU is otherwise idle).  The ones-column of the side-band
        # folds "- t" into d, so no per-lane time iota is needed on the hot path.
        side = side_ref[...]                   # (r, 2G+1) f32 = [idx | events | 1]
        log2_t = t_steps.bit_length() - 1
        k = 2 * g_per_row + 1
        rows = lax.broadcasted_iota(jnp.int32, (k, gt), 0)
        lanes = lax.broadcasted_iota(jnp.int32, (k, gt), 1)
        grp = jnp.right_shift(lanes, log2_t)                       # lane -> packed row
        tpat = jnp.bitwise_and(lanes, t_steps - 1).astype(jnp.float32)  # lane -> time
        e_d = jnp.where(rows == grp, 1.0, 0.0) + jnp.where(rows == k - 1, -tpat, 0.0)
        e_ev = jnp.where(rows == grp + g_per_row, 1.0, 0.0)
        # Exact: |values| <= 127 (bf16/f32 exact), accumulation is f32 on the MXU.
        d = jnp.dot(side, e_d, preferred_element_type=jnp.float32)    # idx - t per lane
        ev = jnp.dot(side, e_ev, preferred_element_type=jnp.float32)  # events per lane
    else:
        # Fallback (no repack): idx/events are (r, 1) columns, broadcast along lanes.
        t_lane = lax.broadcasted_iota(jnp.int32, (r, gt), 1).astype(jnp.float32)
        d = side_ref[:, 0:1] - t_lane
        ev = side_ref[:, 1:2]

    le = d >= 0.0          # t <= idx   (False on pad / over-read rows: idx = -1)
    eq = d == 0.0          # t == idx   (exact small-integer arithmetic in f32)

    # Numerically stable softplus(phi) = max(phi, 0) + log1p(exp(-|phi|)).
    sp = jnp.maximum(phi, 0.0) + jnp.log1p(jnp.exp(-jnp.abs(phi)))

    # Selects (not multiply-by-mask) so Inf/NaN from garbage pad rows never leaks.
    contrib = jnp.where(le, sp, 0.0) - jnp.where(eq, phi, 0.0) * ev

    # Per-step (8, GT) partial: leading-axis reduce = plain vreg adds (no XLU, no
    # scalar round trip).  Final cross-lane sum + alpha/N scaling happen in the wrapper.
    out_ref[...] = jnp.sum(contrib.reshape(r // 8, 8, gt), axis=0)


def loss_log_haz(phi, idx_durations, events, alpha, *, tile_rows=None):
    """alpha * NLLLogistiHazardLoss(phi, idx_durations, events), 'mean' reduction."""
    assert 0.0 <= alpha <= 1.0, "Need `alpha` in [0, 1]."
    n, t = phi.shape

    g = _pick_group(n, t)
    gt = g * t
    n_super = n // g

    # Free row-major views (no copy of the big array, native dtype preserved).
    phi_r = phi.reshape(n_super, gt)
    idx_f = idx_durations.reshape(n_super, g).astype(jnp.float32)
    ev_f = events.reshape(n_super, g).astype(jnp.float32)
    ones = jnp.ones((n_super, 1), jnp.float32)
    side = jnp.concatenate([idx_f, ev_f, ones], axis=1)        # (N/G, 2G+1) side-band

    sub = 16 if phi.dtype.itemsize < 4 else 8
    if tile_rows is None:
        tile_rows = _pick_tile_rows(n_super, gt, side.shape[1], phi.dtype.itemsize)
    else:
        tile_rows = max(sub, _round_up(int(tile_rows), sub))
    grid_n = pl.cdiv(n_super, tile_rows)

    # Pad only the tiny side-band (idx=-1, events=0) so pad / over-read rows mask to
    # zero in-kernel; phi is never padded (its ragged last block is select-masked).
    pad = grid_n * tile_rows - n_super
    if pad:
        pad_rows = jnp.concatenate(
            [jnp.full((pad, g), -1.0, jnp.float32),
             jnp.zeros((pad, g), jnp.float32),
             jnp.ones((pad, 1), jnp.float32)], axis=1)
        side = jnp.concatenate([side, pad_rows], axis=0)

    kernel = functools.partial(_loss_log_haz_kernel, t_steps=t, g_per_row=g)
    partials = pl.pallas_call(
        kernel,
        out_shape=jax.ShapeDtypeStruct((grid_n, 8, gt), jnp.float32),
        grid=(grid_n,),
        in_specs=[
            pl.BlockSpec((tile_rows, gt), lambda i: (i, 0)),             # phi (native)
            pl.BlockSpec((tile_rows, side.shape[1]), lambda i: (i, 0)),  # [idx|ev|1]
        ],
        out_specs=pl.BlockSpec((None, 8, gt), lambda i: (i, 0, 0)),      # per-step partial
        compiler_params=pltpu.CompilerParams(
            dimension_semantics=("parallel",),     # independent steps -> both TCs on v7x
            vmem_limit_bytes=32 * 1024 * 1024),
    )(phi_r, side)

    # Tiny final reduction + alpha / global-N scale in the wrapper.
    return jnp.sum(partials) * jnp.float32(float(alpha) / float(n))


def _reference(phi, idx_durations, events, alpha):
    # Pure-JAX reference of the original (un-fused) BCE + cumsum-gather math.
    n, t = phi.shape
    phi = phi.astype(jnp.float32)
    cols = jnp.arange(t)[None, :]
    idx = idx_durations.reshape(n, 1)
    ev = events.reshape(n, 1).astype(jnp.float32)
    y = jnp.where(cols == idx, ev, 0.0)
    bce = jnp.maximum(phi, 0.0) - phi * y + jnp.log1p(jnp.exp(-jnp.abs(phi)))
    mask = (cols <= idx).astype(phi.dtype)
    return alpha * jnp.mean(jnp.sum(bce * mask, axis=1))


if __name__ == "__main__":
    key = jax.random.PRNGKey(0)
    ks = jax.random.split(key, 12)
    ALPHA = 0.5

    # --- case 1: small f32 batch (module's expected call shape); G=1 path ---
    N, T = 8, 16
    phi = jax.random.normal(ks[0], (N, T), dtype=jnp.float32)
    idx = jax.random.randint(ks[1], (N,), 0, T, dtype=jnp.int32)
    ev = jax.random.bernoulli(ks[2], 0.6, (N,)).astype(jnp.float32)
    out = jax.block_until_ready(loss_log_haz(phi, idx, ev, ALPHA))
    ref = _reference(phi, idx, ev, ALPHA)
    assert jnp.allclose(out, ref, rtol=1e-5, atol=1e-6), (out, ref)

    # --- case 2: bf16 ingest, lane-dense repack (G=8), multi-step parallel grid,
    #             ragged super-rows (125 % 32 != 0) ---
    N2, T2 = 1000, 16
    phi2 = jax.random.normal(ks[3], (N2, T2), dtype=jnp.float32).astype(jnp.bfloat16)
    idx2 = jax.random.randint(ks[4], (N2,), 0, T2, dtype=jnp.int32)
    ev2 = jax.random.bernoulli(ks[5], 0.6, (N2,)).astype(jnp.float32)
    out2 = jax.block_until_ready(loss_log_haz(phi2, idx2, ev2, ALPHA, tile_rows=32))
    ref2 = _reference(phi2, idx2, ev2, ALPHA)
    assert jnp.allclose(out2, ref2, rtol=1e-4, atol=1e-5), (out2, ref2)

    # --- case 3: f32 repack (G=8), several parallel grid steps, ragged ---
    N3, T3 = 4000, 16
    phi3 = jax.random.normal(ks[6], (N3, T3), dtype=jnp.float32)
    idx3 = jax.random.randint(ks[7], (N3,), 0, T3, dtype=jnp.int32)
    ev3 = jax.random.bernoulli(ks[8], 0.6, (N3,)).astype(jnp.float32)
    out3 = jax.block_until_ready(loss_log_haz(phi3, idx3, ev3, ALPHA, tile_rows=64))
    ref3 = _reference(phi3, idx3, ev3, ALPHA)
    assert jnp.allclose(out3, ref3, rtol=1e-4, atol=1e-5), (out3, ref3)

    # --- case 4: non-power-of-two T and N % 8 != 0 (fallback path, ragged block) ---
    N4, T4 = 50, 10
    phi4 = jax.random.normal(ks[9], (N4, T4), dtype=jnp.float32)
    idx4 = jax.random.randint(ks[10], (N4,), 0, T4, dtype=jnp.int32)
    ev4 = jax.random.bernoulli(ks[11], 0.6, (N4,)).astype(jnp.float32)
    out4 = jax.block_until_ready(loss_log_haz(phi4, idx4, ev4, ALPHA))
    ref4 = _reference(phi4, idx4, ev4, ALPHA)
    assert jnp.allclose(out4, ref4, rtol=1e-5, atol=1e-6), (out4, ref4)

    print("KERNEL_OK")
</pallas_src>

<mosaic_0001>
module attributes {stable_mosaic.version = 11 : i64} {
  func.func @_loss_log_haz_kernel(%arg0: i32, %arg1: memref<8x16xf32, #tpu.memory_space<vmem>>, %arg2: memref<8x3xf32, #tpu.memory_space<vmem>>, %arg3: memref<1x8x16xf32, #tpu.memory_space<vmem>>) attributes {dimension_semantics = [#tpu.dimension_semantics<parallel>], iteration_bounds = array<i64: 1>, scalar_prefetch = 0 : i64, scratch_operands = 0 : i64, tpu.core_type = #tpu.core_type<tc>, window_params = [{transform_indices = @transform_0, window_bounds = array<i64: 8, 16>}, {transform_indices = @transform_1, window_bounds = array<i64: 8, 3>}, {transform_indices = @transform_2, window_bounds = array<i64: 1, 8, 16>}]} {
    %c0 = arith.constant 0 : index
    %c0_0 = arith.constant 0 : index
    %0 = vector.load %arg1[%c0, %c0_0] : memref<8x16xf32, #tpu.memory_space<vmem>>, vector<8x16xf32>
    %1 = tpu.iota {dimensions = array<i32: 1>} : vector<8x16xi32>
    %2 = arith.sitofp %1 : vector<8x16xi32> to vector<8x16xf32>
    %c0_1 = arith.constant 0 : index
    %c0_2 = arith.constant 0 : index
    %3 = vector.load %arg2[%c0_1, %c0_2] : memref<8x3xf32, #tpu.memory_space<vmem>>, vector<8x1xf32>
    %4 = vector.broadcast %3 : vector<8x1xf32> to vector<8x16xf32>
    %5 = arith.subf %4, %2 : vector<8x16xf32>
    %c0_3 = arith.constant 0 : index
    %c1 = arith.constant 1 : index
    %6 = vector.load %arg2[%c0_3, %c1] : memref<8x3xf32, #tpu.memory_space<vmem>>, vector<8x1xf32>
    %cst = arith.constant 0.000000e+00 : f32
    %7 = vector.broadcast %cst : f32 to vector<8x16xf32>
    %8 = arith.cmpf oge, %5, %7 : vector<8x16xf32>
    %cst_4 = arith.constant 0.000000e+00 : f32
    %9 = vector.broadcast %cst_4 : f32 to vector<8x16xf32>
    %10 = arith.cmpf oeq, %5, %9 : vector<8x16xf32>
    %cst_5 = arith.constant 0.000000e+00 : f32
    %11 = vector.broadcast %cst_5 : f32 to vector<8x16xf32>
    %12 = arith.maximumf %0, %11 : vector<8x16xf32>
    %13 = math.absf %0 : vector<8x16xf32>
    %cst_6 = arith.constant 0.000000e+00 : f32
    %14 = vector.broadcast %cst_6 : f32 to vector<8x16xf32>
    %15 = arith.subf %14, %13 : vector<8x16xf32>
    %16 = math.exp %15 : vector<8x16xf32>
    %17 = math.log1p %16 : vector<8x16xf32>
    %18 = arith.addf %12, %17 : vector<8x16xf32>
    %cst_7 = arith.constant 0.000000e+00 : f32
    %19 = vector.broadcast %cst_7 : f32 to vector<8x16xf32>
    %20 = arith.select %8, %18, %19 : vector<8x16xi1>, vector<8x16xf32>
    %cst_8 = arith.constant 0.000000e+00 : f32
    %21 = vector.broadcast %cst_8 : f32 to vector<8x16xf32>
    %22 = arith.select %10, %0, %21 : vector<8x16xi1>, vector<8x16xf32>
    %23 = vector.broadcast %6 : vector<8x1xf32> to vector<8x16xf32>
    %24 = arith.mulf %22, %23 : vector<8x16xf32>
    %25 = arith.subf %20, %24 : vector<8x16xf32>
    %26 = vector.shape_cast %25 : vector<8x16xf32> to vector<1x8x16xf32>
    %cst_9 = arith.constant dense<0.000000e+00> : vector<8x16xf32>
    %27 = vector.multi_reduction <add>, %26, %cst_9 [0] : vector<1x8x16xf32> to vector<8x16xf32>
    %c0_10 = arith.constant 0 : index
    %c0_11 = arith.constant 0 : index
    %c0_12 = arith.constant 0 : index
    %28 = vector.load %arg3[%c0_10, %c0_11, %c0_12] : memref<1x8x16xf32, #tpu.memory_space<vmem>>, vector<1x8x16xf32>
    %29 = vector.shape_cast %28 : vector<1x8x16xf32> to vector<8x16xf32>
    %30 = vector.shape_cast %27 : vector<8x16xf32> to vector<1x8x16xf32>
    tpu.vector_store %arg3[%c0_10, %c0_11, %c0_12], %30 {strides = array<i32>} : memref<1x8x16xf32, #tpu.memory_space<vmem>>, vector<1x8x16xf32>,
    return
  }
  func.func @transform_0(%arg0: i32) -> (i32, i32) {
    %c0_i32 = arith.constant 0 : i32
    %c0_i32_0 = arith.constant 0 : i32
    return %arg0, %c0_i32 : i32, i32
  }
  func.func @transform_1(%arg0: i32) -> (i32, i32) {
    %c0_i32 = arith.constant 0 : i32
    %c0_i32_0 = arith.constant 0 : i32
    return %arg0, %c0_i32 : i32, i32
  }
  func.func @transform_2(%arg0: i32) -> (i32, i32, i32) {
    %c0_i32 = arith.constant 0 : i32
    %c0_i32_0 = arith.constant 0 : i32
    %c0_i32_1 = arith.constant 0 : i32
    return %arg0, %c0_i32, %c0_i32_0 : i32, i32, i32
  }
}

</mosaic_0001>

<bundles_post_ra>
// kernel: tpu_custom_call.1
= control target key start
LH: loop header
LB: loop body
LE: loop exit
PB: predicated region body
PF: predicated region fallthrough
CT: control target
= control target key end

     0   :  { %s134_s0 = inlined_call_operand.vmem [shape: f32[8,16], index: 0, kind: input, shape index: {}]   ;;  %s135_s1 = inlined_call_operand.vmem [shape: f32[8,3], index: 1, kind: input, shape index: {}]   ;;  %s136_s2 = inlined_call_operand.hbm [shape: f32[1,8,16], index: 2, kind: output, shape index: {}]  }
   0x1   :  { %v16_v0 = vld [vmem:[%s135_s1] sm:$0xff] }
   0x2   :  { %7 = vsyncpa [#allocation3], 0  ;;  %v98_v1 = vmov 0   ;;  %v99_v2 = vmov 1   ;;  %v12_v3 = vld [vmem:[%s134_s0] sm:$0xff]  ;;  %v13_v10 = vlaneseq  ;;  %s100_s0 = smov [#allocation2]  }
   0x3   :  { %68 = vset.pattern.permute.xlu0 %v98_v1  ;;  %v26_v4 = vand.u32 2147483647, %v12_v3  ;;  %v25_v18 = vmax.f32 %v12_v3, 0.0  ;;  %s57_s1 = sshll.u32 %s100_s0, 4  ;;  %vm49_vm3 = vcmask 130048   ;;  %s58_s1 = int_to_ptr.vmem [resolvable:$true] %s57_s1 }
   0x4   :  { %19 = vperm.xlu0 %68, %v16_v0   ;;  %v14_v13 = vand.u32 127, %v13_v10  ;;  %s74_s13 = scalar_lea.vmem %s58_s1, 128  ;;  %p79_p1 = scmp.lt.s32.totalorder %s58_s1, %s58_s1 }
   0x5   :  { %v27_v5 = vsub.f32 0.0, %v26_v4  ;;  %p75_p0 = scmp.ne.s32.totalorder %s58_s1, %s74_s13  ;;  %p80_p2 = scmp.lt.s32.totalorder %s74_s13, %s74_s13 }
   0x6   :  { %v15_v17 = vcvt.s32.f32 %v14_v13 }
   0x7   :  { %v28_v6 = vmul.f32 1.442695, %v27_v5  ;;  %p81_p3 = por %p80_p2, %p79_p1 }
   0x8   :  { %69 = vset.pattern.permute.xlu0 %v99_v2 }
   0x9   :  { %43 = vperm.xlu0 %69, %v16_v0   ;;  %70 = vpow2.f32 %v28_v6  ;;  %p82_p4 = pnand %p81_p3, %p75_p0 }
  0x13   :  { %v71_v7 = vpop.eup %70 }
  0x14   :  { %v30_v8 = vadd.f32 1.0, %v71_v7  ;;  %v33_v9 = vmul.f32 -0.5, %v71_v7  ;;  %v36_v14 = vand.u32 2147483647, %v71_v7 }
  0x16   :  { %72 = vlog2.f32 %v30_v8  ;;  %v34_v11 = vadd.f32 1.0, %v33_v9  ;;  %vm37_vm0 = vcmp.lt.f32.partialorder %v36_v14, 0.0004427343 }
  0x18   :  { %v35_v16 = vmul.f32 %v71_v7, %v34_v11 }
  0x20   :  { %v73_v12 = vpop.eup %72 }
  0x21   :  { %v32_v15 = vmul.f32 0.6931472, %v73_v12 }
  0x23   :  { %v38_v20 = vsel %vm37_vm0, %v35_v16, %v32_v15 }
  0x24   :  { %v39_v22 = vadd.f32 %v38_v20, %v25_v18 }
  0x83   :  { %v20_v19 = vpop.permute.xlu0 %19 }
  0x84   :  { %v22_v21 = vsub.f32 %v20_v19, %v15_v17 }
  0x86   :  { %vm24_vm1 = vcmp.eq.f32.partialorder %v22_v21, 0.0  ;;  %vm23_vm2 = vcmp.ge.f32.partialorder %v22_v21, 0.0 }
  0x87   :  { %v41_v23 = vsel %vm24_vm1, %v12_v3, 0.0  ;;  %v40_v26 = vsel %vm23_vm2, %v39_v22, 0.0 }
  0x88   :  { %v44_v24 = vpop.permute.xlu0 %43 }
  0x89   :  { %v46_v25 = vmul.f32 %v44_v24, %v41_v23 }
  0x8b   :  { %v47_v27 = vsub.f32 %v40_v26, %v46_v25 }
  0x8d   :  { %50 = vst.msk [vmem:[#allocation2] sm:$0xff] %vm49_vm3, %v47_v27 }
  0x8e   :  { %85 = shalt.err (!%p82_p4)
}
  0x8f   :  { %s86_s16 = scalar_lea.hbm %s136_s2, 128 }
  0x90   :  { %p87_p5 = scmp.ne.s32.totalorder %s136_s2, %s86_s16  ;;  %p90_p6 = scmp.lt.u32.totalorder %s86_s16, %s136_s2 }
  0x92   :  { %p92_p7 = pnand %p90_p6, %p87_p5 }
  0x94   :  { %95 = shalt.err (!%p92_p7)
}
  0x95   :  { %60 = dma.vmem_to_hbm [thread:$0]  %s58_s1, 128, %s136_s2, [#allocation3]  }
  0x96   :  { %96 = dma.done.wait [#allocation3], 128  }
  0x97   :  { %97 = vsyncadd [#allocation3], 4294967168 }
  0x98   :  { %64 = vsyncpa [#allocation3], 1 }

</bundles_post_ra>
